<compile_context>
chip_gen: v7x
topology: tpu7x:2x2x1
jax: 0.10.0
libtpu: 0.0.40
codegen_flags: <defaults>
</compile_context>

<pallas_src>
import functools
import math

import jax
import jax.numpy as jnp
from jax.experimental import pallas as pl
from jax.experimental.pallas import tpu as pltpu


def _round_up(n: int, m: int) -> int:
    return ((n + m - 1) // m) * m


def _pad2d(a, rows: int, cols: int):
    return jnp.pad(a, ((0, rows - a.shape[0]), (0, cols - a.shape[1])))


def _gin_kernel(adj_ref, x_ref, xi_ref, w1_ref, b1_ref, w2_ref, b2_ref,
                out_ref, acc_ref, *, eps: float):
    k = pl.program_id(1)

    @pl.when(k == 0)
    def _():
        # (1 + eps) * x_i self-term initializes the accumulator (replaces the
        # wrapper-side N x N eye-add, saving a full extra adjacency-sized pass).
        acc_ref[...] = (1.0 + eps) * xi_ref[...]

    # Neighbor sum: acc += A[i-tile, k-tile] @ x[k-tile, :].
    # Adjacency arrives as bf16 (half the HBM bytes) and is upcast before the dot
    # so the MXU accumulation matches the f32 reference exactly.
    acc_ref[...] += jnp.dot(adj_ref[...].astype(jnp.float32), x_ref[...],
                            preferred_element_type=jnp.float32)

    # MLP + store only on the final reduction step (inner loop stays pure MXU
    # accumulate; bias broadcasts are not re-materialized per k iteration).
    @pl.when(k == pl.num_programs(1) - 1)
    def _():
        h = acc_ref[...]
        h1 = jnp.dot(h, w1_ref[...], preferred_element_type=jnp.float32) + b1_ref[...]
        h1 = jnp.maximum(h1, 0.0)
        out = jnp.dot(h1, w2_ref[...], preferred_element_type=jnp.float32) + b2_ref[...]
        out_ref[...] = out.astype(out_ref.dtype)


def gin_conv_pallas(x, edge_index, w1, b1, w2, b2, *, eps: float = 0.0,
                    tile_n: int = 512, tile_k: int = 1024):
    """GIN layer: x (N, d_in), edge_index (2, E) with row0=src, row1=dst."""
    N, d_in = x.shape
    d_out = w1.shape[1]
    src, dst = edge_index[0], edge_index[1]

    # Glue: densify edge_index into adjacency (dst rows, src cols) so the sum
    # aggregation becomes a dense MXU matmul.
    # TODO(synk): replace with block-sparse (SMEM nonzero-block lists) for large
    # sparse graphs — the dense O(N^2) stream is the asymptotic cost here.
    adj = jnp.zeros((N, N), dtype=jnp.float32).at[dst, src].add(1.0)

    # --- Tile selection -----------------------------------------------------
    n128 = _round_up(N, 128)
    tile_n = max(128, min(_round_up(tile_n, 128), n128))
    tile_k = max(128, min(_round_up(tile_k, 128), n128))
    n_pad = _round_up(N, math.lcm(tile_n, tile_k))
    # Keep >= 2 row tiles when possible so the "parallel" i axis can shard across
    # both v7x TensorCores.
    if n_pad // tile_n < 2:
        half = n_pad // 2
        if half >= 128 and half % 128 == 0:
            tile_n = half

    d_in_p = _round_up(d_in, 128)
    d_out_p = _round_up(d_out, 128)

    # --- Padding / dtype staging ---------------------------------------------
    x_p = _pad2d(x.astype(jnp.float32), n_pad, d_in_p)
    # bf16 adjacency: exact for integer edge multiplicities <= 256, halves the
    # dominant HBM stream.
    adj_p = _pad2d(adj, n_pad, n_pad).astype(jnp.bfloat16)
    w1_p = _pad2d(w1, d_in_p, d_out_p)
    b1_p = _pad2d(b1.reshape(1, -1), 1, d_out_p)   # padded bias cols are zero
    w2_p = _pad2d(w2, d_out_p, d_out_p)
    b2_p = _pad2d(b2.reshape(1, -1), 1, d_out_p)

    grid = (n_pad // tile_n, n_pad // tile_k)

    # --- VMEM budget (double-buffered streams + weights + scratch), headroom,
    #     capped below v7x's 64 MiB physical VMEM -----------------------------
    vmem_est = (2 * tile_n * tile_k * 2                      # adj tiles (bf16)
                + 2 * tile_k * d_in_p * 4                    # x row tiles
                + 2 * tile_n * d_in_p * 4                    # x self-term tiles
                + 2 * tile_n * d_out_p * 4                   # output tiles
                + tile_n * d_in_p * 4                        # acc scratch
                + 2 * (d_in_p * d_out_p + d_out_p * d_out_p + 2 * d_out_p) * 4)  # weights/biases
    vmem_limit = int(min(max(2 * vmem_est, 16 * 1024 * 1024), 60 * 1024 * 1024))

    kernel = functools.partial(_gin_kernel, eps=float(eps))

    out_p = pl.pallas_call(
        kernel,
        out_shape=jax.ShapeDtypeStruct((n_pad, d_out_p), x.dtype),
        grid_spec=pltpu.PrefetchScalarGridSpec(
            num_scalar_prefetch=0,
            grid=grid,
            in_specs=[
                pl.BlockSpec((tile_n, tile_k), lambda i, k: (i, k)),     # adjacency tile (bf16)
                pl.BlockSpec((tile_k, d_in_p), lambda i, k: (k, 0)),     # x rows for k step
                pl.BlockSpec((tile_n, d_in_p), lambda i, k: (i, 0)),     # x rows for i tile (self-term)
                pl.BlockSpec((d_in_p, d_out_p), lambda i, k: (0, 0)),    # W1 (grid-invariant)
                pl.BlockSpec((1, d_out_p), lambda i, k: (0, 0)),         # b1
                pl.BlockSpec((d_out_p, d_out_p), lambda i, k: (0, 0)),   # W2
                pl.BlockSpec((1, d_out_p), lambda i, k: (0, 0)),         # b2
            ],
            out_specs=pl.BlockSpec((tile_n, d_out_p), lambda i, k: (i, 0)),
            scratch_shapes=[pltpu.VMEM((tile_n, d_in_p), jnp.float32)],
        ),
        compiler_params=pltpu.CompilerParams(
            dimension_semantics=("parallel", "arbitrary"),
            vmem_limit_bytes=vmem_limit),
    )(adj_p, x_p, x_p, w1_p, b1_p, w2_p, b2_p)

    # Slice padded rows / lanes back off.
    return out_p[:N, :d_out]


def gin_conv_reference(x, edge_index, w1, b1, w2, b2, eps: float = 0.0):
    """Pure-JAX reference matching pyg.nn.GINConv + (Lin -> ReLU -> Lin)."""
    src, dst = edge_index[0], edge_index[1]
    aggr = jnp.zeros_like(x).at[dst].add(x[src])
    h = (1.0 + eps) * x + aggr
    h1 = jax.nn.relu(h @ w1 + b1.reshape(1, -1))
    return h1 @ w2 + b2.reshape(1, -1)


if __name__ == "__main__":
    def run_case(key, num_nodes, num_edges, dim_in, dim_out, eps, **tiles):
        ks = jax.random.split(key, 7)
        x = jax.random.normal(ks[0], (num_nodes, dim_in), dtype=jnp.float32)
        src = jax.random.randint(ks[1], (num_edges,), 0, num_nodes)
        dst = jax.random.randint(ks[2], (num_edges,), 0, num_nodes)
        edge_index = jnp.stack([src, dst], axis=0)  # directed: row0=src, row1=dst
        w1 = jax.random.normal(ks[3], (dim_in, dim_out), jnp.float32) * (1.0 / jnp.sqrt(dim_in))
        b1 = jax.random.normal(ks[4], (1, dim_out), jnp.float32) * 0.01
        w2 = jax.random.normal(ks[5], (dim_out, dim_out), jnp.float32) * (1.0 / jnp.sqrt(dim_out))
        b2 = jax.random.normal(ks[6], (1, dim_out), jnp.float32) * 0.01

        out = gin_conv_pallas(x, edge_index, w1, b1, w2, b2, eps=eps, **tiles)
        out = jax.block_until_ready(out)
        ref = gin_conv_reference(x, edge_index, w1, b1, w2, b2, eps=eps)
        assert out.shape == (num_nodes, dim_out)
        assert jnp.allclose(out, ref, atol=1e-4, rtol=1e-4), (
            f"Pallas output mismatch vs reference (N={num_nodes})")

    root = jax.random.PRNGKey(0)
    k1, k2 = jax.random.split(root)

    # Case 1: LayerConfig-like small shapes (dim_in=16, dim_out=32), PyG default
    # eps=0; default tiles clamp to a single-tile grid — exercises the epilogue path.
    run_case(k1, num_nodes=32, num_edges=64, dim_in=16, dim_out=32, eps=0.0)

    # Case 2: multi-tile accumulation path (grid (2, 2) with forced 128x128 tiles),
    # non-multiple-of-128 feature dims, nonzero eps, directed random edges.
    run_case(k2, num_nodes=200, num_edges=600, dim_in=40, dim_out=72, eps=0.3,
             tile_n=128, tile_k=128)

    print("KERNEL_OK")
</pallas_src>

<mosaic_0001>
module attributes {stable_mosaic.version = 11 : i64} {
  func.func @_gin_kernel(%arg0: i32, %arg1: i32, %arg2: memref<128x128xbf16, #tpu.memory_space<vmem>>, %arg3: memref<128x128xf32, #tpu.memory_space<vmem>>, %arg4: memref<128x128xf32, #tpu.memory_space<vmem>>, %arg5: memref<128x128xf32, #tpu.memory_space<vmem>>, %arg6: memref<1x128xf32, #tpu.memory_space<vmem>>, %arg7: memref<128x128xf32, #tpu.memory_space<vmem>>, %arg8: memref<1x128xf32, #tpu.memory_space<vmem>>, %arg9: memref<128x128xf32, #tpu.memory_space<vmem>>, %arg10: memref<128x128xf32, #tpu.memory_space<vmem>>) attributes {dimension_semantics = [#tpu.dimension_semantics<parallel>, #tpu.dimension_semantics<arbitrary>], iteration_bounds = array<i64: 1, 1>, scalar_prefetch = 0 : i64, scratch_operands = 1 : i64, tpu.core_type = #tpu.core_type<tc>, window_params = [{transform_indices = @transform_0, window_bounds = array<i64: 128, 128>}, {transform_indices = @transform_1, window_bounds = array<i64: 128, 128>}, {transform_indices = @transform_2, window_bounds = array<i64: 128, 128>}, {pipeline_mode = #tpu.pipeline_mode<synchronous>, transform_indices = @transform_3, window_bounds = array<i64: 128, 128>}, {pipeline_mode = #tpu.pipeline_mode<synchronous>, transform_indices = @transform_4, window_bounds = array<i64: 1, 128>}, {pipeline_mode = #tpu.pipeline_mode<synchronous>, transform_indices = @transform_5, window_bounds = array<i64: 128, 128>}, {pipeline_mode = #tpu.pipeline_mode<synchronous>, transform_indices = @transform_6, window_bounds = array<i64: 1, 128>}, {transform_indices = @transform_7, window_bounds = array<i64: 128, 128>}]} {
    %c0_i32 = arith.constant 0 : i32
    %0 = arith.cmpi eq, %arg1, %c0_i32 : i32
    %1 = arith.extui %0 : i1 to i32
    %c0_i32_0 = arith.constant 0 : i32
    %2 = arith.cmpi ne, %1, %c0_i32_0 : i32
    scf.if %2 {
      %c0_10 = arith.constant 0 : index
      %c0_11 = arith.constant 0 : index
      %13 = vector.load %arg4[%c0_10, %c0_11] : memref<128x128xf32, #tpu.memory_space<vmem>>, vector<128x128xf32>
      %cst_12 = arith.constant 1.000000e+00 : f32
      %14 = vector.broadcast %cst_12 : f32 to vector<128x128xf32>
      %15 = arith.mulf %14, %13 : vector<128x128xf32>
      %c0_13 = arith.constant 0 : index
      %c0_14 = arith.constant 0 : index
      %16 = vector.load %arg10[%c0_13, %c0_14] : memref<128x128xf32, #tpu.memory_space<vmem>>, vector<128x128xf32>
      tpu.vector_store %arg10[%c0_13, %c0_14], %15 {strides = array<i32>} : memref<128x128xf32, #tpu.memory_space<vmem>>, vector<128x128xf32>,
    } else {
    }
    %c0 = arith.constant 0 : index
    %c0_1 = arith.constant 0 : index
    %3 = vector.load %arg10[%c0, %c0_1] : memref<128x128xf32, #tpu.memory_space<vmem>>, vector<128x128xf32>
    %c0_2 = arith.constant 0 : index
    %c0_3 = arith.constant 0 : index
    %4 = vector.load %arg2[%c0_2, %c0_3] : memref<128x128xbf16, #tpu.memory_space<vmem>>, vector<128x128xbf16>
    %5 = arith.extf %4 : vector<128x128xbf16> to vector<128x128xf32>
    %c0_4 = arith.constant 0 : index
    %c0_5 = arith.constant 0 : index
    %6 = vector.load %arg3[%c0_4, %c0_5] : memref<128x128xf32, #tpu.memory_space<vmem>>, vector<128x128xf32>
    %cst = arith.constant dense<0.000000e+00> : vector<128x128xf32>
    %7 = tpu.matmul %5, %6, %cst {dimension_numbers = #tpu.dot_dimension_numbers<[1], [0], [0], [1], [0, 0, 1, 1], [], []>} : vector<128x128xf32>, vector<128x128xf32>, vector<128x128xf32> -> vector<128x128xf32>
    %8 = arith.addf %3, %7 : vector<128x128xf32>
    %c0_6 = arith.constant 0 : index
    %c0_7 = arith.constant 0 : index
    %9 = vector.load %arg10[%c0_6, %c0_7] : memref<128x128xf32, #tpu.memory_space<vmem>>, vector<128x128xf32>
    tpu.vector_store %arg10[%c0_6, %c0_7], %8 {strides = array<i32>} : memref<128x128xf32, #tpu.memory_space<vmem>>, vector<128x128xf32>,
    %c0_i32_8 = arith.constant 0 : i32
    %10 = arith.cmpi eq, %arg1, %c0_i32_8 : i32
    %11 = arith.extui %10 : i1 to i32
    %c0_i32_9 = arith.constant 0 : i32
    %12 = arith.cmpi ne, %11, %c0_i32_9 : i32
    scf.if %12 {
      %c0_10 = arith.constant 0 : index
      %c0_11 = arith.constant 0 : index
      %13 = vector.load %arg10[%c0_10, %c0_11] : memref<128x128xf32, #tpu.memory_space<vmem>>, vector<128x128xf32>
      %c0_12 = arith.constant 0 : index
      %c0_13 = arith.constant 0 : index
      %14 = vector.load %arg5[%c0_12, %c0_13] : memref<128x128xf32, #tpu.memory_space<vmem>>, vector<128x128xf32>
      %cst_14 = arith.constant dense<0.000000e+00> : vector<128x128xf32>
      %15 = tpu.matmul %13, %14, %cst_14 {dimension_numbers = #tpu.dot_dimension_numbers<[1], [0], [0], [1], [0, 0, 1, 1], [], []>} : vector<128x128xf32>, vector<128x128xf32>, vector<128x128xf32> -> vector<128x128xf32>
      %c0_15 = arith.constant 0 : index
      %c0_16 = arith.constant 0 : index
      %16 = vector.load %arg6[%c0_15, %c0_16] : memref<1x128xf32, #tpu.memory_space<vmem>>, vector<1x128xf32>
      %17 = vector.broadcast %16 : vector<1x128xf32> to vector<128x128xf32>
      %18 = arith.addf %15, %17 : vector<128x128xf32>
      %cst_17 = arith.constant 0.000000e+00 : f32
      %19 = vector.broadcast %cst_17 : f32 to vector<128x128xf32>
      %20 = arith.maximumf %18, %19 : vector<128x128xf32>
      %c0_18 = arith.constant 0 : index
      %c0_19 = arith.constant 0 : index
      %21 = vector.load %arg7[%c0_18, %c0_19] : memref<128x128xf32, #tpu.memory_space<vmem>>, vector<128x128xf32>
      %cst_20 = arith.constant dense<0.000000e+00> : vector<128x128xf32>
      %22 = tpu.matmul %20, %21, %cst_20 {dimension_numbers = #tpu.dot_dimension_numbers<[1], [0], [0], [1], [0, 0, 1, 1], [], []>} : vector<128x128xf32>, vector<128x128xf32>, vector<128x128xf32> -> vector<128x128xf32>
      %c0_21 = arith.constant 0 : index
      %c0_22 = arith.constant 0 : index
      %23 = vector.load %arg8[%c0_21, %c0_22] : memref<1x128xf32, #tpu.memory_space<vmem>>, vector<1x128xf32>
      %24 = vector.broadcast %23 : vector<1x128xf32> to vector<128x128xf32>
      %25 = arith.addf %22, %24 : vector<128x128xf32>
      %c0_23 = arith.constant 0 : index
      %c0_24 = arith.constant 0 : index
      %26 = vector.load %arg9[%c0_23, %c0_24] : memref<128x128xf32, #tpu.memory_space<vmem>>, vector<128x128xf32>
      tpu.vector_store %arg9[%c0_23, %c0_24], %25 {strides = array<i32>} : memref<128x128xf32, #tpu.memory_space<vmem>>, vector<128x128xf32>,
    } else {
    }
    return
  }
  func.func @transform_0(%arg0: i32, %arg1: i32) -> (i32, i32) {
    %c0_i32 = arith.constant 0 : i32
    return %arg0, %arg1 : i32, i32
  }
  func.func @transform_1(%arg0: i32, %arg1: i32) -> (i32, i32) {
    %c0_i32 = arith.constant 0 : i32
    %c0_i32_0 = arith.constant 0 : i32
    return %arg1, %c0_i32 : i32, i32
  }
  func.func @transform_2(%arg0: i32, %arg1: i32) -> (i32, i32) {
    %c0_i32 = arith.constant 0 : i32
    %c0_i32_0 = arith.constant 0 : i32
    return %arg0, %c0_i32 : i32, i32
  }
  func.func @transform_3(%arg0: i32, %arg1: i32) -> (i32, i32) {
    %c0_i32 = arith.constant 0 : i32
    %c0_i32_0 = arith.constant 0 : i32
    %c0_i32_1 = arith.constant 0 : i32
    return %c0_i32, %c0_i32_0 : i32, i32
  }
  func.func @transform_4(%arg0: i32, %arg1: i32) -> (i32, i32) {
    %c0_i32 = arith.constant 0 : i32
    %c0_i32_0 = arith.constant 0 : i32
    %c0_i32_1 = arith.constant 0 : i32
    return %c0_i32, %c0_i32_0 : i32, i32
  }
  func.func @transform_5(%arg0: i32, %arg1: i32) -> (i32, i32) {
    %c0_i32 = arith.constant 0 : i32
    %c0_i32_0 = arith.constant 0 : i32
    %c0_i32_1 = arith.constant 0 : i32
    return %c0_i32, %c0_i32_0 : i32, i32
  }
  func.func @transform_6(%arg0: i32, %arg1: i32) -> (i32, i32) {
    %c0_i32 = arith.constant 0 : i32
    %c0_i32_0 = arith.constant 0 : i32
    %c0_i32_1 = arith.constant 0 : i32
    return %c0_i32, %c0_i32_0 : i32, i32
  }
  func.func @transform_7(%arg0: i32, %arg1: i32) -> (i32, i32) {
    %c0_i32 = arith.constant 0 : i32
    %c0_i32_0 = arith.constant 0 : i32
    return %arg0, %c0_i32 : i32, i32
  }
}

</mosaic_0001>

<bundles_post_ra>
// kernel: tpu_custom_call.1
= control target key start
LH: loop header
LB: loop body
LE: loop exit
PB: predicated region body
PF: predicated region fallthrough
CT: control target
= control target key end

     0   :  { %12 = vsyncpa [#allocation4], 0  ;;  %s1510_s0 = inlined_call_operand.hbm [shape: bf16[128,128], index: 0, kind: input, shape index: {}]   ;;  %s1511_s1 = inlined_call_operand.hbm [shape: f32[128,128], index: 1, kind: input, shape index: {}]   ;;  %s1512_s2 = inlined_call_operand.hbm [shape: f32[128,128], index: 2, kind: input, shape index: {}]   ;;  %s1513_s3 = inlined_call_operand.hbm [shape: f32[128,128], index: 3, kind: input, shape index: {}]   ;;  %s1514_s4 = inlined_call_operand.vmem [shape: f32[1,128], index: 4, kind: input, shape index: {}]   ;;  %s1515_s5 = inlined_call_operand.hbm [shape: f32[128,128], index: 5, kind: input, shape index: {}]   ;;  %s1516_s6 = inlined_call_operand.vmem [shape: f32[1,128], index: 6, kind: input, shape index: {}]   ;;  %s1517_s7 = inlined_call_operand.hbm [shape: f32[128,128], index: 7, kind: output, shape index: {}]  }
   0x1   :  { %13 = vsyncpa [#allocation7], 0 }
   0x2   :  { %14 = vsyncpa [#allocation10], 0 }
   0x3   :  { %15 = vsyncpa [#allocation5], 0  ;;  %s1345_s24 = smov [#allocation6]   ;;  %s1205_s28 = scalar_lea.hbm %s1511_s1, 2048 }
   0x4   :  { %s33_s25 = sshll.u32 %s1345_s24, 4  ;;  %p1206_p0 = scmp.ne.s32.totalorder %s1511_s1, %s1205_s28  ;;  %s34_s25 = int_to_ptr.vmem [resolvable:$true] %s33_s25 }
   0x5   :  { %p1209_p1 = scmp.lt.u32.totalorder %s1205_s28, %s1511_s1 }
   0x7   :  { %p1211_p2 = pnand %p1209_p1, %p1206_p0 }
   0x9   :  { %1214 = shalt.err (!%p1211_p2)
}
   0xa   :  { %s1215_s10 = scalar_lea.vmem %s34_s25, 2048  ;;  %p1220_p4 = scmp.lt.s32.totalorder %s34_s25, %s34_s25 }
   0xb   :  { %p1216_p3 = scmp.ne.s32.totalorder %s34_s25, %s1215_s10  ;;  %p1221_p5 = scmp.lt.s32.totalorder %s1215_s10, %s1215_s10 }
   0xd   :  { %p1222_p6 = por %p1221_p5, %p1220_p4 }
   0xf   :  { %p1223_p7 = pnand %p1222_p6, %p1216_p3 }
  0x11   :  { %1226 = shalt.err (!%p1223_p7)
}
  0x12   :  { %s1346_s11 = smov 128   ;;  %s1347_s12 = smov 8  }
  0x13   :  { %39 = dma.hbm_to_vmem [thread:$0]  %s1511_s1, 2048, %s34_s25, [#allocation7], %s1346_s11, %s1346_s11, %s1347_s12  }
  0x14   :  { %s1348_s15 = smov [#allocation9]   ;;  %s1349_s17 = smov [#allocation3]  }
  0x15   :  { %s57_s16 = sshll.u32 %s1348_s15, 4  ;;  %s21_s18 = sshll.u32 %s1349_s17, 4  ;;  %s58_s16 = int_to_ptr.vmem [resolvable:$true] %s57_s16  ;;  %s22_s18 = int_to_ptr.vmem [resolvable:$true] %s21_s18 }
  0x16   :  { %s1227_s21 = scalar_lea.hbm %s1513_s3, 2048 }
  0x17   :  { %p1228_p8 = scmp.ne.s32.totalorder %s1513_s3, %s1227_s21  ;;  %p1231_p9 = scmp.lt.u32.totalorder %s1227_s21, %s1513_s3 }
  0x19   :  { %p1233_p10 = pnand %p1231_p9, %p1228_p8 }
  0x1b   :  { %1236 = shalt.err (!%p1233_p10)
}
  0x1c   :  { %s1237_s1 = scalar_lea.vmem %s58_s16, 2048  ;;  %p1242_p12 = scmp.lt.s32.totalorder %s58_s16, %s58_s16 }
  0x1d   :  { %p1238_p11 = scmp.ne.s32.totalorder %s58_s16, %s1237_s1  ;;  %p1243_p13 = scmp.lt.s32.totalorder %s1237_s1, %s1237_s1 }
  0x1f   :  { %p1244_p0 = por %p1243_p13, %p1242_p12 }
  0x21   :  { %p1245_p1 = pnand %p1244_p0, %p1238_p11 }
  0x23   :  { %1248 = shalt.err (!%p1245_p1)
}
  0x24   :  { %63 = dma.hbm_to_vmem [thread:$0]  %s1513_s3, 2048, %s58_s16, [#allocation10], %s1346_s11, %s1346_s11, %s1347_s12  }
  0x25   :  { %s1249_s30 = scalar_lea.hbm %s1510_s0, 1024 }
  0x26   :  { %p1250_p2 = scmp.ne.s32.totalorder %s1510_s0, %s1249_s30  ;;  %p1253_p3 = scmp.lt.u32.totalorder %s1249_s30, %s1510_s0 }
  0x28   :  { %p1255_p4 = pnand %p1253_p3, %p1250_p2 }
  0x2a   :  { %1258 = shalt.err (!%p1255_p4)
}
  0x2b   :  { %s1259_s14 = scalar_lea.vmem %s22_s18, 1024  ;;  %p1264_p6 = scmp.lt.s32.totalorder %s22_s18, %s22_s18 }
  0x2c   :  { %p1260_p5 = scmp.ne.s32.totalorder %s22_s18, %s1259_s14  ;;  %p1265_p7 = scmp.lt.s32.totalorder %s1259_s14, %s1259_s14 }
  0x2e   :  { %p1266_p8 = por %p1265_p7, %p1264_p6 }
  0x30   :  { %p1267_p9 = pnand %p1266_p8, %p1260_p5 }
  0x32   :  { %1270 = shalt.err (!%p1267_p9)
}
  0x33   :  { %s1350_s3 = smov 64   ;;  %s1351_s15 = smov 4  }
  0x34   :  { %27 = dma.hbm_to_vmem [thread:$0]  %s1510_s0, 1024, %s22_s18, [#allocation4], %s1350_s3, %s1350_s3, %s1351_s15  }
  0x35   :  { %s1352_s19 = smov [#allocation8]   ;;  %s1353_s21 = smov [#allocation11]  }
  0x36   :  { %s45_s20 = sshll.u32 %s1352_s19, 4  ;;  %s71_s22 = sshll.u32 %s1353_s21, 4  ;;  %s46_s20 = int_to_ptr.vmem [resolvable:$true] %s45_s20  ;;  %s72_s22 = int_to_ptr.vmem [resolvable:$true] %s71_s22 }
  0x37   :  { %s1271_s26 = scalar_lea.hbm %s1512_s2, 2048 }
  0x38   :  { %p1272_p10 = scmp.ne.s32.totalorder %s1512_s2, %s1271_s26  ;;  %p1275_p11 = scmp.lt.u32.totalorder %s1271_s26, %s1512_s2 }
  0x3a   :  { %p1277_p12 = pnand %p1275_p11, %p1272_p10 }
  0x3c   :  { %1280 = shalt.err (!%p1277_p12)
}
  0x3d   :  { %s1281_s0 = scalar_lea.vmem %s46_s20, 2048  ;;  %p1286_p0 = scmp.lt.s32.totalorder %s46_s20, %s46_s20 }
  0x3e   :  { %p1282_p13 = scmp.ne.s32.totalorder %s46_s20, %s1281_s0  ;;  %p1287_p1 = scmp.lt.s32.totalorder %s1281_s0, %s1281_s0 }
  0x40   :  { %p1288_p2 = por %p1287_p1, %p1286_p0 }
  0x42   :  { %p1289_p3 = pnand %p1288_p2, %p1282_p13 }
  0x44   :  { %1292 = shalt.err (!%p1289_p3)
}
  0x45   :  { %51 = dma.hbm_to_vmem [thread:$0]  %s1512_s2, 2048, %s46_s20, [#allocation7], %s1346_s11, %s1346_s11, %s1347_s12  }
  0x46   :  { %s1293_s9 = scalar_lea.hbm %s1515_s5, 2048 }
  0x47   :  { %p1294_p4 = scmp.ne.s32.totalorder %s1515_s5, %s1293_s9  ;;  %p1297_p5 = scmp.lt.u32.totalorder %s1293_s9, %s1515_s5 }
  0x49   :  { %p1299_p6 = pnand %p1297_p5, %p1294_p4 }
  0x4b   :  { %1302 = shalt.err (!%p1299_p6)
}
  0x4c   :  { %s1303_s15 = scalar_lea.vmem %s72_s22, 2048  ;;  %p1308_p8 = scmp.lt.s32.totalorder %s72_s22, %s72_s22 }
  0x4d   :  { %p1304_p7 = scmp.ne.s32.totalorder %s72_s22, %s1303_s15  ;;  %p1309_p9 = scmp.lt.s32.totalorder %s1303_s15, %s1303_s15 }
  0x4f   :  { %p1310_p10 = por %p1309_p9, %p1308_p8 }
  0x51   :  { %p1311_p11 = pnand %p1310_p10, %p1304_p7 }
  0x53   :  { %1314 = shalt.err (!%p1311_p11)
}
  0x54   :  { %77 = dma.hbm_to_vmem [thread:$0]  %s1515_s5, 2048, %s72_s22, [#allocation10], %s1346_s11, %s1346_s11, %s1347_s12  }
  0x55   :  { %1337 = dma.done.wait [#allocation4], 1024  }
  0x56   :  { %1338 = vsyncadd [#allocation4], 4294966272 }
  0x57   :  { %1339 = dma.done.wait [#allocation7], 4096  }
  0x58   :  { %1340 = vsyncadd [#allocation7], 4294963200 }
  0x59   :  { %1341 = dma.done.wait [#allocation10], 4096  }
  0x5a   :  { %1342 = vsyncadd [#allocation10], 4294963200  ;;  %v179_v0 = vld [vmem:[#allocation6] sm:$0xff]  ;;  %v180_v1 = vld [vmem:[#allocation6 + $0x8] sm:$0xff] }
  0x5b   :  { %v181_v2 = vld [vmem:[#allocation6 + $0x10] sm:$0xff]  ;;  %v1083_v3 = vpack.c.bf16 %v180_v1, %v179_v0  ;;  %v182_v4 = vld [vmem:[#allocation6 + $0x18] sm:$0xff]  ;;  %v183_v6 = vld [vmem:[#allocation6 + $0x20] sm:$0xff] }
  0x5c   :  { %v1087_v5 = vpack.c.bf16 %v182_v4, %v181_v2  ;;  %v184_v7 = vld [vmem:[#allocation6 + $0x28] sm:$0xff]  ;;  %v1467_v9 = vld [vmem:[#allocation3] sm:$0xff]   ;;  %v185_v10 = vld [vmem:[#allocation6 + $0x30] sm:$0xff] }
  0x5d   :  { %1084 = vmatprep.subr.bf16.mxu0 %v1083_v3  ;;  %v1091_v8 = vpack.c.bf16 %v184_v7, %v183_v6  ;;  %v186_v11 = vld [vmem:[#allocation6 + $0x38] sm:$0xff]  ;;  %v782_v12 = vunpack.c.l.bf16 %v1467_v9  ;;  %v391_v13 = vld [vmem:[#allocation9] sm:$0xff]  ;;  %v392_v14 = vld [vmem:[#allocation9 + $0x8] sm:$0xff]  ;;  %v783_v48 = vunpack.c.h.bf16 %v1467_v9 }
  0x5e   :  { %1086 = vmatpush3.bf16.msra.mxu0 %v1083_v3  ;;  %v393_v15 = vld [vmem:[#allocation9 + $0x10] sm:$0xff]  ;;  %v1095_v16 = vpack.c.bf16 %v186_v11, %v185_v10  ;;  %v394_v17 = vld [vmem:[#allocation9 + $0x18] sm:$0xff]  ;;  %v187_v18 = vld [vmem:[#allocation6 + $0x40] sm:$0xff]  ;;  %v1115_v20 = vpack.c.bf16 %v392_v14, %v391_v13 }
  0x5f   :  { %1088 = vmatprep.subr.bf16.mxu0 %v1087_v5  ;;  %947 = vmatprep.mubr.f32.mxu0 %v782_v12  ;;  %v188_v19 = vld [vmem:[#allocation6 + $0x48] sm:$0xff]  ;;  %v1119_v21 = vpack.c.bf16 %v394_v17, %v393_v15  ;;  %v395_v22 = vld [vmem:[#allocation9 + $0x20] sm:$0xff]  ;;  %v189_v25 = vld [vmem:[#allocation6 + $0x50] sm:$0xff] }
  0x60   :  { %v396_v23 = vld [vmem:[#allocation9 + $0x28] sm:$0xff]  ;;  %1116 = vmatprep.subr.bf16.mxu1 %v1115_v20  ;;  %v1099_v24 = vpack.c.bf16 %v188_v19, %v187_v18  ;;  %v190_v26 = vld [vmem:[#allocation6 + $0x58] sm:$0xff]  ;;  %v397_v28 = vld [vmem:[#allocation9 + $0x30] sm:$0xff] }
  0x61   :  { %1118 = vmatpush3.bf16.msra.mxu1 %v1115_v20  ;;  %v1123_v27 = vpack.c.bf16 %v396_v23, %v395_v22  ;;  %v398_v29 = vld [vmem:[#allocation9 + $0x38] sm:$0xff]  ;;  %v1103_v30 = vpack.c.bf16 %v190_v26, %v189_v25  ;;  %v191_v31 = vld [vmem:[#allocation6 + $0x60] sm:$0xff]  ;;  %v192_v32 = vld [vmem:[#allocation6 + $0x68] sm:$0xff] }
  0x62   :  { %1090 = vmatpush3.bf16.msra.mxu0 %v1087_v5  ;;  %1120 = vmatprep.subr.bf16.mxu1 %v1119_v21  ;;  %v1127_v33 = vpack.c.bf16 %v398_v29, %v397_v28  ;;  %v399_v34 = vld [vmem:[#allocation9 + $0x40] sm:$0xff]  ;;  %v400_v35 = vld [vmem:[#allocation9 + $0x48] sm:$0xff]  ;;  %v1107_v36 = vpack.c.bf16 %v192_v32, %v191_v31  ;;  %v193_v37 = vld [vmem:[#allocation6 + $0x70] sm:$0xff] }
  0x63   :  { %1092 = vmatprep.subr.bf16.mxu0 %v1091_v8  ;;  %v194_v38 = vld [vmem:[#allocation6 + $0x78] sm:$0xff]  ;;  %v1131_v39 = vpack.c.bf16 %v400_v35, %v399_v34  ;;  %v401_v40 = vld [vmem:[#allocation9 + $0x50] sm:$0xff]  ;;  %v403_v44 = vld [vmem:[#allocation9 + $0x60] sm:$0xff] }
  0x64   :  { %v402_v41 = vld [vmem:[#allocation9 + $0x58] sm:$0xff]  ;;  %v1111_v42 = vpack.c.bf16 %v194_v38, %v193_v37  ;;  %v404_v45 = vld [vmem:[#allocation9 + $0x68] sm:$0xff]  ;;  %v813_v50 = vld [vmem:[#allocation3 + $0x10] sm:$0xff]  }
  0x65   :  { %1122 = vmatpush3.bf16.msra.mxu1 %v1119_v21  ;;  %v1135_v43 = vpack.c.bf16 %v402_v41, %v401_v40  ;;  %v812_v46 = vld [vmem:[#allocation3 + $0x8] sm:$0xff]   ;;  %v1139_v47 = vpack.c.bf16 %v404_v45, %v403_v44  ;;  %v790_v52 = vunpack.c.l.bf16 %v813_v50  ;;  %v814_v53 = vld [vmem:[#allocation3 + $0x18] sm:$0xff]   ;;  %v791_v54 = vunpack.c.h.bf16 %v813_v50  ;;  %v815_v56 = vld [vmem:[#allocation3 + $0x20] sm:$0xff]  }
  0x66   :  { %1094 = vmatpush3.bf16.msra.mxu0 %v1091_v8  ;;  %1124 = vmatprep.subr.bf16.mxu1 %v1123_v27  ;;  %v786_v49 = vunpack.c.l.bf16 %v812_v46  ;;  %v787_v51 = vunpack.c.h.bf16 %v812_v46  ;;  %v794_v55 = vunpack.c.l.bf16 %v814_v53  ;;  %v795_v57 = vunpack.c.h.bf16 %v814_v53  ;;  %v816_v59 = vld [vmem:[#allocation3 + $0x28] sm:$0xff]   ;;  %v817_v62 = vld [vmem:[#allocation3 + $0x30] sm:$0xff]   ;;  %v818_v1 = vld [vmem:[#allocation3 + $0x38] sm:$0xff]  }
  0x67   :  { %1096 = vmatprep.subr.bf16.mxu0 %v1095_v16  ;;  %v798_v58 = vunpack.c.l.bf16 %v815_v56  ;;  %v799_v60 = vunpack.c.h.bf16 %v815_v56  ;;  %v802_v61 = vunpack.c.l.bf16 %v816_v59  ;;  %v803_v63 = vunpack.c.h.bf16 %v816_v59  ;;  %v405_v5 = vld [vmem:[#allocation9 + $0x70] sm:$0xff]  ;;  %v406_v6 = vld [vmem:[#allocation9 + $0x78] sm:$0xff]  ;;  %v575_v8 = vld [vmem:[#allocation11] sm:$0xff] }
  0x68   :  { %v806_v0 = vunpack.c.l.bf16 %v817_v62  ;;  %v807_v2 = vunpack.c.h.bf16 %v817_v62  ;;  %v810_v3 = vunpack.c.l.bf16 %v818_v1  ;;  %v811_v4 = vunpack.c.h.bf16 %v818_v1  ;;  %v576_v9 = vld [vmem:[#allocation11 + $0x8] sm:$0xff]  ;;  %v577_v10 = vld [vmem:[#allocation11 + $0x10] sm:$0xff]  ;;  %v578_v12 = vld [vmem:[#allocation11 + $0x18] sm:$0xff] }
  0x69   :  { %1126 = vmatpush3.bf16.msra.mxu1 %v1123_v27  ;;  %v1143_v7 = vpack.c.bf16 %v406_v6, %v405_v5  ;;  %v1147_v11 = vpack.c.bf16 %v576_v9, %v575_v8  ;;  %v1151_v13 = vpack.c.bf16 %v578_v12, %v577_v10  ;;  %v579_v14 = vld [vmem:[#allocation11 + $0x20] sm:$0xff]  ;;  %v580_v15 = vld [vmem:[#allocation11 + $0x28] sm:$0xff]  ;;  %v581_v17 = vld [vmem:[#allocation11 + $0x30] sm:$0xff] }
  0x6a   :  { %1098 = vmatpush3.bf16.msra.mxu0 %v1095_v16  ;;  %1128 = vmatprep.subr.bf16.mxu1 %v1127_v33  ;;  %v1155_v16 = vpack.c.bf16 %v580_v15, %v579_v14  ;;  %v582_v18 = vld [vmem:[#allocation11 + $0x38] sm:$0xff]  ;;  %v583_v20 = vld [vmem:[#allocation11 + $0x40] sm:$0xff]  ;;  %v584_v21 = vld [vmem:[#allocation11 + $0x48] sm:$0xff] }
  0x6b   :  { %1100 = vmatprep.subr.bf16.mxu0 %v1099_v24  ;;  %v1159_v19 = vpack.c.bf16 %v582_v18, %v581_v17  ;;  %v1471_v22 = vpack.c.bf16 %v584_v21, %v583_v20  ;;  %v585_v23 = vld [vmem:[#allocation11 + $0x50] sm:$0xff]  ;;  %v587_v26 = vld [vmem:[#allocation11 + $0x60] sm:$0xff]  ;;  %v588_v27 = vld [vmem:[#allocation11 + $0x68] sm:$0xff] }
  0x6c   :  { %v1478_v28 = vpack.c.bf16 %v588_v27, %v587_v26  ;;  %v99_v29 = vld [vmem:[#allocation8] sm:$0xff]  ;;  %v101_v35 = vld [vmem:[#allocation8 + $0x10] sm:$0xff]  ;;  %v114_v8 = vld [vmem:[#allocation8 + $0x78] sm:$0xff] }
  0x6d   :  { %1130 = vmatpush3.bf16.msra.mxu1 %v1127_v33  ;;  %v103_v41 = vld [vmem:[#allocation8 + $0x20] sm:$0xff]  ;;  %v109_v59 = vld [vmem:[#allocation8 + $0x50] sm:$0xff]  ;;  %v590_v14 = vld [vmem:[#allocation11 + $0x78] sm:$0xff] }
  0x6e   :  { %1102 = vmatpush3.bf16.msra.mxu0 %v1099_v24  ;;  %1132 = vmatprep.subr.bf16.mxu1 %v1131_v39  ;;  %v586_v24 = vld [vmem:[#allocation11 + $0x58] sm:$0xff]  ;;  %v107_v53 = vld [vmem:[#allocation8 + $0x40] sm:$0xff] }
  0x6f   :  { %1104 = vmatprep.subr.bf16.mxu0 %v1103_v30  ;;  %v1474_v25 = vpack.c.bf16 %v586_v24, %v585_v23  ;;  %v111_v1 = vld [vmem:[#allocation8 + $0x60] sm:$0xff] }
  0x71   :  { %1134 = vmatpush3.bf16.msra.mxu1 %v1131_v39 }
  0x72   :  { %1106 = vmatpush3.bf16.msra.mxu0 %v1103_v30  ;;  %1136 = vmatprep.subr.bf16.mxu1 %v1135_v43  ;;  %v100_v30 = vld [vmem:[#allocation8 + $0x8] sm:$0xff] }
  0x73   :  { %1108 = vmatprep.subr.bf16.mxu0 %v1107_v36 }
  0x75   :  { %1138 = vmatpush3.bf16.msra.mxu1 %v1135_v43 }
  0x76   :  { %1110 = vmatpush3.bf16.msra.mxu0 %v1107_v36  ;;  %1140 = vmatprep.subr.bf16.mxu1 %v1139_v47  ;;  %v102_v36 = vld [vmem:[#allocation8 + $0x18] sm:$0xff] }
  0x77   :  { %1112 = vmatprep.subr.bf16.mxu0 %v1111_v42 }
  0x79   :  { %1142 = vmatpush3.bf16.msra.mxu1 %v1139_v47  ;;  %v105_v47 = vld [vmem:[#allocation8 + $0x30] sm:$0xff] }
  0x7a   :  { %1114 = vmatpush3.bf16.msra.mxu0 %v1111_v42  ;;  %1144 = vmatprep.subr.bf16.mxu1 %v1143_v7  ;;  %v104_v42 = vld [vmem:[#allocation8 + $0x28] sm:$0xff] }
  0x7b   :  { %1148 = vmatprep.subr.bf16.mxu0 %v1147_v11 }
  0x7d   :  { %948 = vmatmul.mubr.f32.vlgmr.msra.gmra.mrb[0].mxu0 %v783_v48  ;;  %1146 = vmatpush3.bf16.msra.mxu1 %v1143_v7  ;;  %v106_v48 = vld [vmem:[#allocation8 + $0x38] sm:$0xff]  ;;  %v113_v7 = vld [vmem:[#allocation8 + $0x70] sm:$0xff] }
  0x7e   :  { %950 = vmatprep.mubr.f32.mxu0 %v786_v49  ;;  %1179 = vmatprep.subr.bf16.mxu1 %v1147_v11 }
  0x7f   :  { %1150 = vmatpush3.bf16.msra.mxu0 %v1147_v11 }
  0x80   :  { %1152 = vmatprep.subr.bf16.mxu0 %v1151_v13 }
  0x81   :  { %951 = vmatmul.mubr.f32.gmra.mrb[2].mxu0 %v787_v51 }
  0x82   :  { %953 = vmatprep.mubr.f32.mxu0 %v790_v52 }
  0x83   :  { %1154 = vmatpush3.bf16.msra.mxu0 %v1151_v13 }
  0x84   :  { %1156 = vmatprep.subr.bf16.mxu0 %v1155_v16 }
  0x85   :  { %954 = vmatmul.mubr.f32.gmra.mrb[4].mxu0 %v791_v54  ;;  %v108_v54 = vld [vmem:[#allocation8 + $0x48] sm:$0xff] }
  0x86   :  { %956 = vmatprep.mubr.f32.mxu0 %v794_v55 }
  0x87   :  { %1158 = vmatpush3.bf16.msra.mxu0 %v1155_v16 }
  0x88   :  { %1160 = vmatprep.subr.bf16.mxu0 %v1159_v19 }
  0x89   :  { %957 = vmatmul.mubr.f32.gmra.mrb[6].mxu0 %v795_v57 }
  0x8a   :  { %959 = vmatprep.mubr.f32.mxu0 %v798_v58 }
  0x8b   :  { %1162 = vmatpush3.bf16.msra.mxu0 %v1159_v19 }
  0x8c   :  { %1164 = vmatprep.subr.bf16.mxu0 %v1471_v22 }
  0x8d   :  { %960 = vmatmul.mubr.f32.gmra.mrb[8].mxu0 %v799_v60  ;;  %v110_v60 = vld [vmem:[#allocation8 + $0x58] sm:$0xff] }
  0x8e   :  { %962 = vmatprep.mubr.f32.mxu0 %v802_v61 }
  0x8f   :  { %1166 = vmatpush3.bf16.msra.mxu0 %v1471_v22 }
  0x90   :  { %1168 = vmatprep.subr.bf16.mxu0 %v1474_v25 }
  0x91   :  { %963 = vmatmul.mubr.f32.gmra.mrb[10].mxu0 %v803_v63 }
  0x92   :  { %965 = vmatprep.mubr.f32.mxu0 %v806_v0 }
  0x93   :  { %1170 = vmatpush3.bf16.msra.mxu0 %v1474_v25 }
  0x94   :  { %1172 = vmatprep.subr.bf16.mxu0 %v1478_v28 }
  0x95   :  { %966 = vmatmul.mubr.f32.gmra.mrb[12].mxu0 %v807_v2  ;;  %v112_v2 = vld [vmem:[#allocation8 + $0x68] sm:$0xff] }
  0x96   :  { %968 = vmatprep.mubr.f32.mxu0 %v810_v3 }
  0x97   :  { %1174 = vmatpush3.bf16.msra.mxu0 %v1478_v28 }
  0x99   :  { %969 = vmatmul.mubr.f32.gmra.mrb[14].mxu0 %v811_v4 }
 0x150   :  { %v949_v31 = vpop.f32.mrb[0].mxu0 }
 0x151   :  { %v261_v32 = vpop.f32.mrb[1].mxu0  ;;  %v341_v34 = vadd.f32 %v949_v31, %v100_v30 }
 0x152   :  { %v340_v33 = vadd.f32 %v261_v32, %v99_v29 }
 0x154   :  { %v952_v37 = vpop.f32.mrb[2].mxu0  ;;  %1003 = vmatprep.mubr.f32.mxu1 %v340_v33 }
 0x155   :  { %v271_v38 = vpop.f32.mrb[3].mxu0  ;;  %1004 = vmatmul.mubr.f32.vlgmr.msra.gmra.mrb[0].mxu1 %v341_v34  ;;  %v343_v40 = vadd.f32 %v952_v37, %v102_v36 }
 0x156   :  { %v342_v39 = vadd.f32 %v271_v38, %v101_v35  ;;  %1187 = vmatpush3.bf16.msra.mxu1 %v1147_v11 }
 0x157   :  { %1180 = vmatprep.subr.bf16.mxu1 %v1151_v13 }
 0x158   :  { %v955_v43 = vpop.f32.mrb[4].mxu0  ;;  %1006 = vmatprep.mubr.f32.mxu1 %v342_v39 }
 0x159   :  { %v281_v44 = vpop.f32.mrb[5].mxu0  ;;  %1007 = vmatmul.mubr.f32.gmra.mrb[2].mxu1 %v343_v40  ;;  %v345_v46 = vadd.f32 %v955_v43, %v104_v42 }
 0x15a   :  { %v344_v45 = vadd.f32 %v281_v44, %v103_v41  ;;  %1188 = vmatpush3.bf16.msra.mxu1 %v1151_v13  ;;  %v589_v13 = vld [vmem:[#allocation11 + $0x70] sm:$0xff] }
 0x15b   :  { %1181 = vmatprep.subr.bf16.mxu1 %v1155_v16  ;;  %v1175_v15 = vpack.c.bf16 %v590_v14, %v589_v13 }
 0x15c   :  { %v958_v49 = vpop.f32.mrb[6].mxu0  ;;  %1009 = vmatprep.mubr.f32.mxu1 %v344_v45 }
 0x15d   :  { %v291_v50 = vpop.f32.mrb[7].mxu0  ;;  %1010 = vmatmul.mubr.f32.gmra.mrb[4].mxu1 %v345_v46  ;;  %v347_v52 = vadd.f32 %v958_v49, %v106_v48  ;;  %1176 = vmatprep.subr.bf16.mxu0 %v1175_v15 }
 0x15e   :  { %v346_v51 = vadd.f32 %v291_v50, %v105_v47  ;;  %1189 = vmatpush3.bf16.msra.mxu1 %v1155_v16  ;;  %1178 = vmatpush3.bf16.msra.mxu0 %v1175_v15  ;;  %v778_v16 = vld [vmem:[%s1514_s4] ss:$0 sm:$0xff] }
 0x15f   :  { %1182 = vmatprep.subr.bf16.mxu1 %v1159_v19 }
 0x160   :  { %v961_v55 = vpop.f32.mrb[8].mxu0  ;;  %1012 = vmatprep.mubr.f32.mxu1 %v346_v51 }
 0x161   :  { %v301_v56 = vpop.f32.mrb[9].mxu0  ;;  %1013 = vmatmul.mubr.f32.gmra.mrb[6].mxu1 %v347_v52  ;;  %v349_v58 = vadd.f32 %v961_v55, %v108_v54 }
 0x162   :  { %v348_v57 = vadd.f32 %v301_v56, %v107_v53  ;;  %1190 = vmatpush3.bf16.msra.mxu1 %v1159_v19 }
 0x163   :  { %1183 = vmatprep.subr.bf16.mxu1 %v1471_v22 }
 0x164   :  { %v964_v61 = vpop.f32.mrb[10].mxu0  ;;  %1015 = vmatprep.mubr.f32.mxu1 %v348_v57 }
 0x165   :  { %v311_v62 = vpop.f32.mrb[11].mxu0  ;;  %1016 = vmatmul.mubr.f32.gmra.mrb[8].mxu1 %v349_v58  ;;  %v351_v0 = vadd.f32 %v964_v61, %v110_v60 }
 0x166   :  { %v350_v63 = vadd.f32 %v311_v62, %v109_v59  ;;  %1191 = vmatpush3.bf16.msra.mxu1 %v1471_v22 }
 0x167   :  { %1184 = vmatprep.subr.bf16.mxu1 %v1474_v25 }
 0x168   :  { %v967_v3 = vpop.f32.mrb[12].mxu0  ;;  %1018 = vmatprep.mubr.f32.mxu1 %v350_v63 }
 0x169   :  { %v321_v4 = vpop.f32.mrb[13].mxu0  ;;  %1019 = vmatmul.mubr.f32.gmra.mrb[10].mxu1 %v351_v0  ;;  %v353_v6 = vadd.f32 %v967_v3, %v112_v2 }
 0x16a   :  { %v352_v5 = vadd.f32 %v321_v4, %v111_v1  ;;  %1192 = vmatpush3.bf16.msra.mxu1 %v1474_v25  ;;  %v779_v1 = vld [vmem:[%s1516_s6] ss:$0 sm:$0xff]  ;;  %s1354_s6 = smov [#allocation12]  }
 0x16b   :  { %1185 = vmatprep.subr.bf16.mxu1 %v1478_v28  ;;  %s764_s20 = sshll.u32 %s1354_s6, 4  ;;  %s765_s20 = int_to_ptr.vmem [resolvable:$true] %s764_s20 }
 0x16c   :  { %v970_v9 = vpop.f32.mrb[14].mxu0  ;;  %1021 = vmatprep.mubr.f32.mxu1 %v352_v5  ;;  %s1315_s21 = scalar_lea.vmem %s765_s20, 2048  ;;  %p1320_p13 = scmp.lt.s32.totalorder %s765_s20, %s765_s20 }
 0x16d   :  { %v331_v10 = vpop.f32.mrb[15].mxu0  ;;  %1022 = vmatmul.mubr.f32.gmra.mrb[12].mxu1 %v353_v6  ;;  %v355_v12 = vadd.f32 %v970_v9, %v114_v8  ;;  %p1316_p12 = scmp.ne.s32.totalorder %s765_s20, %s1315_s21  ;;  %p1321_p0 = scmp.lt.s32.totalorder %s1315_s21, %s1315_s21 }
 0x16e   :  { %v354_v11 = vadd.f32 %v331_v10, %v113_v7  ;;  %1193 = vmatpush3.bf16.msra.mxu1 %v1478_v28 }
 0x16f   :  { %1186 = vmatprep.subr.bf16.mxu1 %v1175_v15  ;;  %p1322_p1 = por %p1321_p0, %p1320_p13 }
 0x170   :  { %1024 = vmatprep.mubr.f32.mxu1 %v354_v11 }
 0x171   :  { %1025 = vmatmul.mubr.f32.gmra.mrb[14].mxu1 %v355_v12  ;;  %p1323_p2 = pnand %p1322_p1, %p1316_p12 }
 0x172   :  { %1194 = vmatpush3.bf16.msra.mxu1 %v1175_v15 }
 0x228   :  { %v1005_v17 = vpop.f32.mrb[0].mxu1 }
 0x229   :  { %v486_v18 = vadd.f32 %v1005_v17, %v778_v16  ;;  %v480_v19 = vpop.f32.mrb[1].mxu1 }
 0x22a   :  { %v481_v20 = vadd.f32 %v778_v16, %v480_v19 }
 0x22b   :  { %v560_v23 = vmax.f32 %v486_v18, 0.0 }
 0x22c   :  { %v559_v21 = vmax.f32 %v481_v20, 0.0  ;;  %v1008_v22 = vpop.f32.mrb[2].mxu1 }
 0x22d   :  { %v496_v24 = vadd.f32 %v1008_v22, %v778_v16  ;;  %v490_v25 = vpop.f32.mrb[3].mxu1 }
 0x22e   :  { %v491_v26 = vadd.f32 %v778_v16, %v490_v25  ;;  %1059 = vmatprep.mubr.f32.mxu0 %v559_v21 }
 0x22f   :  { %1060 = vmatmul.mubr.f32.vlgmr.msra.gmra.mrb[16].mxu0 %v560_v23  ;;  %v562_v29 = vmax.f32 %v496_v24, 0.0 }
 0x230   :  { %v561_v27 = vmax.f32 %v491_v26, 0.0  ;;  %v1011_v28 = vpop.f32.mrb[4].mxu1 }
 0x231   :  { %v506_v30 = vadd.f32 %v1011_v28, %v778_v16  ;;  %v500_v31 = vpop.f32.mrb[5].mxu1 }
 0x232   :  { %v501_v32 = vadd.f32 %v778_v16, %v500_v31  ;;  %1062 = vmatprep.mubr.f32.mxu0 %v561_v27 }
 0x233   :  { %1063 = vmatmul.mubr.f32.gmra.mrb[18].mxu0 %v562_v29  ;;  %v564_v35 = vmax.f32 %v506_v30, 0.0 }
 0x234   :  { %v563_v33 = vmax.f32 %v501_v32, 0.0  ;;  %v1014_v34 = vpop.f32.mrb[6].mxu1 }
 0x235   :  { %v516_v36 = vadd.f32 %v1014_v34, %v778_v16  ;;  %v510_v37 = vpop.f32.mrb[7].mxu1 }
 0x236   :  { %v511_v38 = vadd.f32 %v778_v16, %v510_v37  ;;  %1065 = vmatprep.mubr.f32.mxu0 %v563_v33 }
 0x237   :  { %1066 = vmatmul.mubr.f32.gmra.mrb[20].mxu0 %v564_v35  ;;  %v566_v41 = vmax.f32 %v516_v36, 0.0 }
 0x238   :  { %v565_v39 = vmax.f32 %v511_v38, 0.0  ;;  %v1017_v40 = vpop.f32.mrb[8].mxu1 }
 0x239   :  { %v526_v42 = vadd.f32 %v1017_v40, %v778_v16  ;;  %v520_v43 = vpop.f32.mrb[9].mxu1 }
 0x23a   :  { %v521_v44 = vadd.f32 %v778_v16, %v520_v43  ;;  %1068 = vmatprep.mubr.f32.mxu0 %v565_v39 }
 0x23b   :  { %1069 = vmatmul.mubr.f32.gmra.mrb[22].mxu0 %v566_v41  ;;  %v568_v47 = vmax.f32 %v526_v42, 0.0 }
 0x23c   :  { %v567_v45 = vmax.f32 %v521_v44, 0.0  ;;  %v1020_v46 = vpop.f32.mrb[10].mxu1 }
 0x23d   :  { %v536_v48 = vadd.f32 %v1020_v46, %v778_v16  ;;  %v530_v49 = vpop.f32.mrb[11].mxu1 }
 0x23e   :  { %v531_v50 = vadd.f32 %v778_v16, %v530_v49  ;;  %1071 = vmatprep.mubr.f32.mxu1 %v567_v45 }
 0x23f   :  { %1072 = vmatmul.mubr.f32.vlgmr.msra.gmra.mrb[16].mxu1 %v568_v47  ;;  %v570_v53 = vmax.f32 %v536_v48, 0.0 }
 0x240   :  { %v569_v51 = vmax.f32 %v531_v50, 0.0  ;;  %v1023_v52 = vpop.f32.mrb[12].mxu1 }
 0x241   :  { %v546_v54 = vadd.f32 %v1023_v52, %v778_v16  ;;  %v540_v55 = vpop.f32.mrb[13].mxu1 }
 0x242   :  { %v541_v56 = vadd.f32 %v778_v16, %v540_v55  ;;  %1074 = vmatprep.mubr.f32.mxu1 %v569_v51 }
 0x243   :  { %1075 = vmatmul.mubr.f32.gmra.mrb[18].mxu1 %v570_v53  ;;  %v572_v59 = vmax.f32 %v546_v54, 0.0 }
 0x244   :  { %v571_v57 = vmax.f32 %v541_v56, 0.0  ;;  %v1026_v58 = vpop.f32.mrb[14].mxu1 }
 0x245   :  { %v556_v60 = vadd.f32 %v1026_v58, %v778_v16  ;;  %v550_v61 = vpop.f32.mrb[15].mxu1 }
 0x246   :  { %v551_v62 = vadd.f32 %v778_v16, %v550_v61  ;;  %1077 = vmatprep.mubr.f32.mxu1 %v571_v57 }
 0x247   :  { %1078 = vmatmul.mubr.f32.gmra.mrb[20].mxu1 %v572_v59  ;;  %v574_v0 = vmax.f32 %v556_v60, 0.0 }
 0x248   :  { %v573_v63 = vmax.f32 %v551_v62, 0.0 }
 0x24a   :  { %1080 = vmatprep.mubr.f32.mxu1 %v573_v63 }
 0x24b   :  { %1081 = vmatmul.mubr.f32.gmra.mrb[22].mxu1 %v574_v0 }
 0x302   :  { %v1061_v2 = vpop.f32.mrb[16].mxu0 }
 0x303   :  { %v670_v3 = vadd.f32 %v1061_v2, %v779_v1  ;;  %v664_v4 = vpop.f32.mrb[17].mxu0 }
 0x304   :  { %v665_v5 = vadd.f32 %v779_v1, %v664_v4 }
 0x305   :  { %744 = vst [vmem:[#allocation12 + $0x8] sm:$0xff] %v670_v3 }
 0x306   :  { %743 = vst [vmem:[#allocation12] sm:$0xff] %v665_v5  ;;  %v1064_v6 = vpop.f32.mrb[18].mxu0 }
 0x307   :  { %v680_v7 = vadd.f32 %v1064_v6, %v779_v1  ;;  %v674_v8 = vpop.f32.mrb[19].mxu0 }
 0x308   :  { %v675_v9 = vadd.f32 %v779_v1, %v674_v8 }
 0x309   :  { %746 = vst [vmem:[#allocation12 + $0x18] sm:$0xff] %v680_v7 }
 0x30a   :  { %745 = vst [vmem:[#allocation12 + $0x10] sm:$0xff] %v675_v9  ;;  %v1067_v10 = vpop.f32.mrb[20].mxu0 }
 0x30b   :  { %v690_v11 = vadd.f32 %v1067_v10, %v779_v1  ;;  %v684_v12 = vpop.f32.mrb[21].mxu0 }
 0x30c   :  { %v685_v13 = vadd.f32 %v779_v1, %v684_v12 }
 0x30d   :  { %748 = vst [vmem:[#allocation12 + $0x28] sm:$0xff] %v690_v11 }
 0x30e   :  { %747 = vst [vmem:[#allocation12 + $0x20] sm:$0xff] %v685_v13  ;;  %v1070_v14 = vpop.f32.mrb[22].mxu0 }
 0x30f   :  { %v700_v15 = vadd.f32 %v1070_v14, %v779_v1  ;;  %v694_v16 = vpop.f32.mrb[23].mxu0 }
 0x310   :  { %v695_v17 = vadd.f32 %v779_v1, %v694_v16 }
 0x311   :  { %750 = vst [vmem:[#allocation12 + $0x38] sm:$0xff] %v700_v15 }
 0x312   :  { %749 = vst [vmem:[#allocation12 + $0x30] sm:$0xff] %v695_v17  ;;  %v1073_v18 = vpop.f32.mrb[16].mxu1 }
 0x313   :  { %v710_v19 = vadd.f32 %v1073_v18, %v779_v1  ;;  %v704_v20 = vpop.f32.mrb[17].mxu1 }
 0x314   :  { %v705_v21 = vadd.f32 %v779_v1, %v704_v20 }
 0x315   :  { %752 = vst [vmem:[#allocation12 + $0x48] sm:$0xff] %v710_v19 }
 0x316   :  { %751 = vst [vmem:[#allocation12 + $0x40] sm:$0xff] %v705_v21  ;;  %v1076_v22 = vpop.f32.mrb[18].mxu1 }
 0x317   :  { %v720_v23 = vadd.f32 %v1076_v22, %v779_v1  ;;  %v714_v24 = vpop.f32.mrb[19].mxu1 }
 0x318   :  { %v715_v25 = vadd.f32 %v779_v1, %v714_v24 }
 0x319   :  { %754 = vst [vmem:[#allocation12 + $0x58] sm:$0xff] %v720_v23 }
 0x31a   :  { %753 = vst [vmem:[#allocation12 + $0x50] sm:$0xff] %v715_v25  ;;  %v1079_v26 = vpop.f32.mrb[20].mxu1 }
 0x31b   :  { %v730_v27 = vadd.f32 %v1079_v26, %v779_v1  ;;  %v724_v28 = vpop.f32.mrb[21].mxu1 }
 0x31c   :  { %v725_v29 = vadd.f32 %v779_v1, %v724_v28 }
 0x31d   :  { %756 = vst [vmem:[#allocation12 + $0x68] sm:$0xff] %v730_v27 }
 0x31e   :  { %755 = vst [vmem:[#allocation12 + $0x60] sm:$0xff] %v725_v29  ;;  %v1082_v30 = vpop.f32.mrb[22].mxu1 }
 0x31f   :  { %v740_v31 = vadd.f32 %v1082_v30, %v779_v1  ;;  %v734_v32 = vpop.f32.mrb[23].mxu1 }
 0x320   :  { %v735_v33 = vadd.f32 %v779_v1, %v734_v32 }
 0x321   :  { %758 = vst [vmem:[#allocation12 + $0x78] sm:$0xff] %v740_v31 }
 0x322   :  { %757 = vst [vmem:[#allocation12 + $0x70] sm:$0xff] %v735_v33 }
 0x323   :  { %1326 = shalt.err (!%p1323_p2)
}
 0x324   :  { %s1327_s24 = scalar_lea.hbm %s1517_s7, 2048 }
 0x325   :  { %p1328_p3 = scmp.ne.s32.totalorder %s1517_s7, %s1327_s24  ;;  %p1331_p4 = scmp.lt.u32.totalorder %s1327_s24, %s1517_s7 }
 0x327   :  { %p1333_p5 = pnand %p1331_p4, %p1328_p3 }
 0x329   :  { %1336 = shalt.err (!%p1333_p5)
}
 0x32a   :  { %770 = dma.vmem_to_hbm [thread:$0]  %s765_s20, 2048, %s1517_s7, [#allocation5], %s1346_s11, %s1346_s11, %s1347_s12  }
 0x32b   :  { %1343 = dma.done.wait [#allocation5], 2048  }
 0x32c   :  { %1344 = vsyncadd [#allocation5], 4294965248 }
 0x32d   :  { %774 = vsyncpa [#allocation4], 1 }
 0x32e   :  { %775 = vsyncpa [#allocation7], 1 }
 0x32f   :  { %776 = vsyncpa [#allocation10], 1 }
 0x330   :  { %777 = vsyncpa [#allocation5], 1 }

</bundles_post_ra>
